<compile_context>
chip_gen: v6e
topology: v6e:2x2x1
jax: 0.10.0
libtpu: 0.0.40
codegen_flags: <defaults>
</compile_context>

<pallas_src>
import jax
import jax.numpy as jnp
from jax.experimental import pallas as pl
from jax.experimental.pallas import tpu as pltpu


def mlp_kernel(x_ref, w1_ref, b1_ref, w2_ref, b2_ref, em_ref, out_ref):
    # Linear 1: (TM, 12) @ (12, H) + (1, H)
    x = x_ref[...]
    h = jnp.dot(x, w1_ref[...], preferred_element_type=jnp.float32) + b1_ref[...]
    em_ref[...] = h.astype(em_ref.dtype)

    # Linear 2: (TM, H) @ (H, 12) + (1, 12)
    logits = jnp.dot(h, w2_ref[...], preferred_element_type=jnp.float32) + b2_ref[...]

    # Row-wise softmax over the 12 logits (dim=1 of the 2-D input).
    m = jnp.max(logits, axis=-1, keepdims=True)
    e = jnp.exp(logits - m)
    s = jnp.sum(e, axis=-1, keepdims=True)
    out_ref[...] = (e / s).astype(out_ref.dtype)


def mlp_forward(x, w1, b1, w2, b2, *, tm=8192):
    """x: (B, 12); w1: (12, H); b1: (H,); w2: (H, 12); b2: (12,)."""
    B, in_dim = x.shape
    hidden = w1.shape[1]
    out_dim = w2.shape[1]

    # Batch tile: multiple of 8 sublanes, capped at `tm`, never larger than the
    # (sublane-rounded) batch.  The last grid block may be ragged; Pallas masks
    # its out-of-bounds stores, so no explicit padding/slicing passes needed.
    TM = min(tm, max(8, ((B + 7) // 8) * 8))
    TM = ((TM + 7) // 8) * 8

    b1_2d = b1.reshape(1, hidden)
    b2_2d = b2.reshape(1, out_dim)

    grid = (pl.cdiv(B, TM),)

    # Advisory cost model: tiny FLOPs, HBM-bound (x + em + softmax streams plus
    # the small resident weights).
    cost = pl.CostEstimate(
        flops=2 * B * (in_dim * hidden + hidden * out_dim),
        transcendentals=B * out_dim,
        bytes_accessed=4 * (
            B * (in_dim + hidden + out_dim)
            + in_dim * hidden + hidden * out_dim + hidden + out_dim
        ),
    )

    out_em, output = pl.pallas_call(
        mlp_kernel,
        out_shape=(
            jax.ShapeDtypeStruct((B, hidden), jnp.float32),
            jax.ShapeDtypeStruct((B, out_dim), jnp.float32),
        ),
        grid=grid,
        in_specs=[
            pl.BlockSpec((TM, in_dim), lambda i: (i, 0)),        # x: batch-tiled
            pl.BlockSpec((in_dim, hidden), lambda i: (0, 0)),    # w1: resident
            pl.BlockSpec((1, hidden), lambda i: (0, 0)),         # b1: resident
            pl.BlockSpec((hidden, out_dim), lambda i: (0, 0)),   # w2: resident
            pl.BlockSpec((1, out_dim), lambda i: (0, 0)),        # b2: resident
        ],
        out_specs=(
            pl.BlockSpec((TM, hidden), lambda i: (i, 0)),        # out_em
            pl.BlockSpec((TM, out_dim), lambda i: (i, 0)),       # softmax output
        ),
        compiler_params=pltpu.CompilerParams(
            dimension_semantics=("parallel",),                   # megacore (v7x)
            vmem_limit_bytes=48 * 1024 * 1024,                   # fits all gens
        ),
        cost_estimate=cost,
    )(x, w1, b1_2d, w2, b2_2d)

    return out_em, output


def reference_forward(x, w1, b1, w2, b2):
    em = x @ w1 + b1
    logits = em @ w2 + b2
    return em, jax.nn.softmax(logits, axis=1)


if __name__ == "__main__":
    key = jax.random.PRNGKey(0)
    IN_DIM = 12
    HIDDEN = 32

    k_x, k_w1, k_b1, k_w2, k_b2 = jax.random.split(key, 5)

    # Deterministic parameter init (uniform, like PyTorch's default scale).
    bound1 = 1.0 / jnp.sqrt(IN_DIM)
    w1 = jax.random.uniform(k_w1, (IN_DIM, HIDDEN), jnp.float32, -bound1, bound1)
    b1 = jax.random.uniform(k_b1, (HIDDEN,), jnp.float32, -bound1, bound1)
    bound2 = 1.0 / jnp.sqrt(HIDDEN)
    w2 = jax.random.uniform(k_w2, (HIDDEN, IN_DIM), jnp.float32, -bound2, bound2)
    b2 = jax.random.uniform(k_b2, (IN_DIM,), jnp.float32, -bound2, bound2)

    # Case 1: small batch, single grid step (TM clamps to the batch).
    x_small = jax.random.normal(k_x, (8, IN_DIM), dtype=jnp.float32)
    em1, out1 = mlp_forward(x_small, w1, b1, w2, b2)
    jax.block_until_ready(em1)
    jax.block_until_ready(out1)
    ref_em1, ref_out1 = reference_forward(x_small, w1, b1, w2, b2)
    assert jnp.allclose(em1, ref_em1, atol=1e-5, rtol=1e-5)
    assert jnp.allclose(out1, ref_out1, atol=1e-5, rtol=1e-5)
    assert jnp.allclose(jnp.sum(out1, axis=1), 1.0, atol=1e-5)

    # Case 2: forced small tile -> multi-step grid with a ragged last block
    # (B=50, TM=16 -> 4 steps, final block has only 2 valid rows).
    x_big = jax.random.normal(k_x, (50, IN_DIM), dtype=jnp.float32)
    em2, out2 = mlp_forward(x_big, w1, b1, w2, b2, tm=16)
    jax.block_until_ready(em2)
    jax.block_until_ready(out2)
    ref_em2, ref_out2 = reference_forward(x_big, w1, b1, w2, b2)
    assert em2.shape == (50, HIDDEN) and out2.shape == (50, IN_DIM)
    assert jnp.allclose(em2, ref_em2, atol=1e-5, rtol=1e-5)
    assert jnp.allclose(out2, ref_out2, atol=1e-5, rtol=1e-5)
    assert jnp.allclose(jnp.sum(out2, axis=1), 1.0, atol=1e-5)

    print("KERNEL_OK")
</pallas_src>

<mosaic_0001>
module attributes {stable_mosaic.version = 11 : i64} {
  func.func @mlp_kernel(%arg0: i32, %arg1: memref<8x12xf32, #tpu.memory_space<vmem>>, %arg2: memref<12x32xf32, #tpu.memory_space<vmem>>, %arg3: memref<1x32xf32, #tpu.memory_space<vmem>>, %arg4: memref<32x12xf32, #tpu.memory_space<vmem>>, %arg5: memref<1x12xf32, #tpu.memory_space<vmem>>, %arg6: memref<8x32xf32, #tpu.memory_space<vmem>>, %arg7: memref<8x12xf32, #tpu.memory_space<vmem>>) attributes {dimension_semantics = [#tpu.dimension_semantics<parallel>], iteration_bounds = array<i64: 1>, scalar_prefetch = 0 : i64, scratch_operands = 0 : i64, tpu.core_type = #tpu.core_type<tc>, window_params = [{transform_indices = @transform_0, window_bounds = array<i64: 8, 12>}, {pipeline_mode = #tpu.pipeline_mode<synchronous>, transform_indices = @transform_1, window_bounds = array<i64: 12, 32>}, {pipeline_mode = #tpu.pipeline_mode<synchronous>, transform_indices = @transform_2, window_bounds = array<i64: 1, 32>}, {pipeline_mode = #tpu.pipeline_mode<synchronous>, transform_indices = @transform_3, window_bounds = array<i64: 32, 12>}, {pipeline_mode = #tpu.pipeline_mode<synchronous>, transform_indices = @transform_4, window_bounds = array<i64: 1, 12>}, {transform_indices = @transform_5, window_bounds = array<i64: 8, 32>}, {transform_indices = @transform_6, window_bounds = array<i64: 8, 12>}]} {
    %c0 = arith.constant 0 : index
    %c0_0 = arith.constant 0 : index
    %0 = vector.load %arg1[%c0, %c0_0] : memref<8x12xf32, #tpu.memory_space<vmem>>, vector<8x12xf32>
    %c0_1 = arith.constant 0 : index
    %c0_2 = arith.constant 0 : index
    %1 = vector.load %arg2[%c0_1, %c0_2] : memref<12x32xf32, #tpu.memory_space<vmem>>, vector<12x32xf32>
    %cst = arith.constant dense<0.000000e+00> : vector<8x32xf32>
    %2 = tpu.matmul %0, %1, %cst {dimension_numbers = #tpu.dot_dimension_numbers<[1], [0], [0], [1], [0, 0, 1, 1], [], []>} : vector<8x12xf32>, vector<12x32xf32>, vector<8x32xf32> -> vector<8x32xf32>
    %c0_3 = arith.constant 0 : index
    %c0_4 = arith.constant 0 : index
    %3 = vector.load %arg3[%c0_3, %c0_4] : memref<1x32xf32, #tpu.memory_space<vmem>>, vector<1x32xf32>
    %4 = vector.broadcast %3 : vector<1x32xf32> to vector<8x32xf32>
    %5 = arith.addf %2, %4 : vector<8x32xf32>
    %c0_5 = arith.constant 0 : index
    %c0_6 = arith.constant 0 : index
    %6 = vector.load %arg6[%c0_5, %c0_6] : memref<8x32xf32, #tpu.memory_space<vmem>>, vector<8x32xf32>
    tpu.vector_store %arg6[%c0_5, %c0_6], %5 {strides = array<i32>} : memref<8x32xf32, #tpu.memory_space<vmem>>, vector<8x32xf32>,
    %c0_7 = arith.constant 0 : index
    %c0_8 = arith.constant 0 : index
    %7 = vector.load %arg4[%c0_7, %c0_8] : memref<32x12xf32, #tpu.memory_space<vmem>>, vector<32x12xf32>
    %cst_9 = arith.constant dense<0.000000e+00> : vector<8x12xf32>
    %8 = tpu.matmul %5, %7, %cst_9 {dimension_numbers = #tpu.dot_dimension_numbers<[1], [0], [0], [1], [0, 0, 1, 1], [], []>} : vector<8x32xf32>, vector<32x12xf32>, vector<8x12xf32> -> vector<8x12xf32>
    %c0_10 = arith.constant 0 : index
    %c0_11 = arith.constant 0 : index
    %9 = vector.load %arg5[%c0_10, %c0_11] : memref<1x12xf32, #tpu.memory_space<vmem>>, vector<1x12xf32>
    %10 = vector.broadcast %9 : vector<1x12xf32> to vector<8x12xf32>
    %11 = arith.addf %8, %10 : vector<8x12xf32>
    %cst_12 = arith.constant dense<0xFF800000> : vector<8xf32>
    %12 = vector.multi_reduction <maximumf>, %11, %cst_12 [1] : vector<8x12xf32> to vector<8xf32>
    %13 = vector.shape_cast %12 : vector<8xf32> to vector<8x1xf32>
    %14 = vector.broadcast %13 : vector<8x1xf32> to vector<8x12xf32>
    %15 = arith.subf %11, %14 : vector<8x12xf32>
    %16 = math.exp %15 : vector<8x12xf32>
    %cst_13 = arith.constant dense<0.000000e+00> : vector<8xf32>
    %17 = vector.multi_reduction <add>, %16, %cst_13 [1] : vector<8x12xf32> to vector<8xf32>
    %18 = vector.shape_cast %17 : vector<8xf32> to vector<8x1xf32>
    %19 = vector.broadcast %18 : vector<8x1xf32> to vector<8x12xf32>
    %20 = arith.divf %16, %19 : vector<8x12xf32>
    %c0_14 = arith.constant 0 : index
    %c0_15 = arith.constant 0 : index
    %21 = vector.load %arg7[%c0_14, %c0_15] : memref<8x12xf32, #tpu.memory_space<vmem>>, vector<8x12xf32>
    tpu.vector_store %arg7[%c0_14, %c0_15], %20 {strides = array<i32>} : memref<8x12xf32, #tpu.memory_space<vmem>>, vector<8x12xf32>,
    return
  }
  func.func @transform_0(%arg0: i32) -> (i32, i32) {
    %c0_i32 = arith.constant 0 : i32
    %c0_i32_0 = arith.constant 0 : i32
    return %arg0, %c0_i32 : i32, i32
  }
  func.func @transform_1(%arg0: i32) -> (i32, i32) {
    %c0_i32 = arith.constant 0 : i32
    %c0_i32_0 = arith.constant 0 : i32
    %c0_i32_1 = arith.constant 0 : i32
    return %c0_i32, %c0_i32_0 : i32, i32
  }
  func.func @transform_2(%arg0: i32) -> (i32, i32) {
    %c0_i32 = arith.constant 0 : i32
    %c0_i32_0 = arith.constant 0 : i32
    %c0_i32_1 = arith.constant 0 : i32
    return %c0_i32, %c0_i32_0 : i32, i32
  }
  func.func @transform_3(%arg0: i32) -> (i32, i32) {
    %c0_i32 = arith.constant 0 : i32
    %c0_i32_0 = arith.constant 0 : i32
    %c0_i32_1 = arith.constant 0 : i32
    return %c0_i32, %c0_i32_0 : i32, i32
  }
  func.func @transform_4(%arg0: i32) -> (i32, i32) {
    %c0_i32 = arith.constant 0 : i32
    %c0_i32_0 = arith.constant 0 : i32
    %c0_i32_1 = arith.constant 0 : i32
    return %c0_i32, %c0_i32_0 : i32, i32
  }
  func.func @transform_5(%arg0: i32) -> (i32, i32) {
    %c0_i32 = arith.constant 0 : i32
    %c0_i32_0 = arith.constant 0 : i32
    return %arg0, %c0_i32 : i32, i32
  }
  func.func @transform_6(%arg0: i32) -> (i32, i32) {
    %c0_i32 = arith.constant 0 : i32
    %c0_i32_0 = arith.constant 0 : i32
    return %arg0, %c0_i32 : i32, i32
  }
}

</mosaic_0001>

<bundles_post_ra>
// kernel: tpu_custom_call.1
= control target key start
LH: loop header
LB: loop body
LE: loop exit
PB: predicated region body
PF: predicated region fallthrough
CT: control target
= control target key end

     0   :  { %12 = vsyncpa [#allocation3], 0  ;;  %vm38_vm0 = vcmask 1043456   ;;  %v321_v1 = vmov 0.0   ;;  %vm322_vm1 = vmmov 0   ;;  %vm34_vm2 = vcmask 97280   ;;  %s399_s0 = inlined_call_operand.vmem [shape: f32[8,12], index: 0, kind: input, shape index: {}]   ;;  %s400_s1 = inlined_call_operand.vmem [shape: f32[12,32], index: 1, kind: input, shape index: {}]   ;;  %s401_s2 = inlined_call_operand.vmem [shape: f32[1,32], index: 2, kind: input, shape index: {}]   ;;  %s402_s3 = inlined_call_operand.vmem [shape: f32[32,12], index: 3, kind: input, shape index: {}]   ;;  %s403_s4 = inlined_call_operand.vmem [shape: f32[1,12], index: 4, kind: input, shape index: {}]   ;;  %s404_s5 = inlined_call_operand.hbm [shape: f32[8,32], index: 5, kind: output, shape index: {0}]   ;;  %s405_s6 = inlined_call_operand.hbm [shape: f32[8,12], index: 6, kind: output, shape index: {1}]  }
   0x1   :  { %v26_v0 = vld [vmem:[%s400_s1 + $0x8] sm:$0xf]  ;;  %251 = vmatprep.subr.mxu0 %v321_v1  ;;  %v25_v2 = vld [vmem:[%s400_s1] sm:$0xff]  ;;  %255 = vmatprep.mubr.msk.f32.mxu0 %vm322_vm1, %v321_v1  ;;  %v117_v3 = vld [vmem:[%s402_s3 + $0x18] sm:$0xff] }
   0x2   :  { %252 = vmatpush3.msk.msra.mxu0 %vm38_vm0, %v26_v0  ;;  %v24_v4 = vld [vmem:[%s399_s0] sm:$0xff]  ;;  %258 = vmatprep.subr.mxu1 %v321_v1  ;;  %v116_v5 = vld [vmem:[%s402_s3 + $0x10] sm:$0xff] }
   0x3   :  { %13 = vsyncpa [#allocation5], 0  ;;  %253 = vmatprep.subr.mxu0 %v321_v1  ;;  %259 = vmatpush3.msra.mxu1 %v117_v3  ;;  %v115_v6 = vld [vmem:[%s402_s3 + $0x8] sm:$0xff]  ;;  %v114_v7 = vld [vmem:[%s402_s3] sm:$0xff]  ;;  %vm112_vm3 = vcmask 261120  }
   0x4   :  { %254 = vmatpush3.msra.mxu0 %v25_v2  ;;  %260 = vmatprep.subr.mxu1 %v321_v1  ;;  %v238_v8 = vld [vmem:[%s401_s2] ss:$0 sm:$0xff]  ;;  %s323_s2 = smov [#allocation2]  }
   0x5   :  { %256 = vmatmul.mubr.msk.f32.vlgmr.msra.gmra.mxu0 %vm34_vm2, %v24_v4  ;;  %261 = vmatpush3.msra.mxu1 %v116_v5  ;;  %v241_v12 = vld [vmem:[%s403_s4] ss:$0 sm:$0xff]  ;;  %s216_s3 = sshll.u32 %s323_s2, 4  ;;  %s217_s3 = int_to_ptr.vmem [resolvable:$true] %s216_s3 }
   0x6   :  { %262 = vmatprep.subr.mxu1 %v321_v1  ;;  %266 = vmatprep.mubr.msk.f32.mxu1 %vm322_vm1, %v321_v1  ;;  %s277_s13 = scalar_lea.vmem %s217_s3, 128  ;;  %p282_p1 = scmp.lt.s32.totalorder %s217_s3, %s217_s3 }
   0x7   :  { %263 = vmatpush3.msra.mxu1 %v115_v6  ;;  %p278_p0 = scmp.ne.s32.totalorder %s217_s3, %s277_s13  ;;  %p283_p2 = scmp.lt.s32.totalorder %s277_s13, %s277_s13 }
   0x8   :  { %264 = vmatprep.subr.mxu1 %v321_v1 }
   0x9   :  { %265 = vmatpush3.msra.mxu1 %v114_v7  ;;  %p284_p3 = por %p283_p2, %p282_p1 }
   0xb   :  { %p285_p4 = pnand %p284_p3, %p278_p0 }
  0xc5   :  { %v108_v9 = vpop.f32.mrf.mxu0 }
  0xc6   :  { %v109_v10 = vadd.f32 %v238_v8, %v108_v9 }
  0xc7   :  { %v257_v11 = vpop.f32.mrf.mxu0 }
  0xc8   :  { %267 = vmatmul.mubr.msk.f32.vlgmr.msra.gmra.mxu1 %vm112_vm3, %v109_v10  ;;  %113 = vst.msk [vmem:[#allocation2] sm:$0xff] %vm112_vm3, %v109_v10 }
 0x188   :  { %v194_v13 = vpop.f32.mrf.mxu1 }
 0x189   :  { %v195_v14 = vadd.f32 %v241_v12, %v194_v13 }
 0x18a   :  { %v268_v15 = vpop.f32.mrf.mxu1 }
 0x18b   :  { %v198_v16 = vsel %vm34_vm2, %v195_v14, -inf }
 0x18c   :  { %199 = vmax.xlane.f32.xlu0 %v198_v16 }
 0x215   :  { %v200_v17 = vpop.xlane.xlu0 %199 }
 0x216   :  { %v201_v18 = vsub.f32 %v195_v14, %v200_v17 }
 0x218   :  { %v202_v19 = vmul.f32 1.442695, %v201_v18 }
 0x21a   :  { %273 = vpow2.f32 %v202_v19 }
 0x227   :  { %v274_v20 = vpop.eup %273 }
 0x228   :  { %v204_v21 = vsel %vm34_vm2, %v274_v20, 0.0 }
 0x229   :  { %205 = vadd.xlane.f32.xlu0 %v204_v21 }
 0x22a   :  { %288 = shalt.err (!%p285_p4)
}
 0x22b   :  { %219 = dma.vmem_to_hbm [thread:$0]  %s217_s3, 128, %s404_s5, [#allocation3]  }
 0x22c   :  { %s324_s15 = smov [#allocation4]  }
 0x22d   :  { %s226_s16 = sshll.u32 %s324_s15, 4  ;;  %s227_s16 = int_to_ptr.vmem [resolvable:$true] %s226_s16 }
 0x22e   :  { %s297_s17 = scalar_lea.vmem %s227_s16, 128  ;;  %p302_p6 = scmp.lt.s32.totalorder %s227_s16, %s227_s16 }
 0x22f   :  { %p298_p5 = scmp.ne.s32.totalorder %s227_s16, %s297_s17  ;;  %p303_p7 = scmp.lt.s32.totalorder %s297_s17, %s297_s17 }
 0x231   :  { %p304_p8 = por %p303_p7, %p302_p6 }
 0x233   :  { %p305_p9 = pnand %p304_p8, %p298_p5 }
 0x2b2   :  { %v206_v22 = vpop.xlane.xlu0 %205 }
 0x2b3   :  { %275 = vrcp.f32 %v206_v22 }
 0x2c0   :  { %v276_v23 = vpop.eup %275 }
 0x2c1   :  { %v208_v24 = vmul.f32 %v276_v23, %v274_v20 }
 0x2c3   :  { %209 = vst.msk [vmem:[#allocation4] sm:$0xff] %vm34_vm2, %v208_v24 }
 0x2c4   :  { %308 = shalt.err (!%p305_p9)
}
 0x2c5   :  { %229 = dma.vmem_to_hbm [thread:$0]  %s227_s16, 128, %s405_s6, [#allocation5]  }
 0x2c6   :  { %317 = dma.done.wait [#allocation3], 128  }
 0x2c7   :  { %318 = vsyncadd [#allocation3], 4294967168 }
 0x2c8   :  { %319 = dma.done.wait [#allocation5], 128  }
 0x2c9   :  { %320 = vsyncadd [#allocation5], 4294967168 }
 0x2ca   :  { %236 = vsyncpa [#allocation3], 1 }
 0x2cb   :  { %237 = vsyncpa [#allocation5], 1 }

</bundles_post_ra>
